<compile_context>
chip_gen: v5e
topology: v5e:2x2
jax: 0.10.0
libtpu: 0.0.40
codegen_flags: <defaults>
</compile_context>

<pallas_src>
import functools
import math

import jax
import jax.numpy as jnp
from jax.experimental import pallas as pl
from jax.experimental.pallas import tpu as pltpu


# ----------------------------------------------------------------------------
# Tiling helpers (dtype-aware, generation-agnostic budgets).
# ----------------------------------------------------------------------------
_ROW_BUDGET_BYTES = 8 * 1024 * 1024    # ~8 MiB of real data per block
_VMEM_LIMIT_BYTES = 48 * 1024 * 1024   # headroom inside v7x's 64 MiB VMEM
_MAX_ROW_TILE = 1024
_MIN_GRID_STEPS = 4                    # keep both v7x TensorCores fed


def _cdiv(a, b):
    return -(-a // b)


def _round_up(x, m):
    return _cdiv(x, m) * m


def _sublane_pack(itemsize):
    # Sub-32-bit dtypes pack along sublanes: 8 rows (f32), 16 (bf16), 32 (int8).
    return max(8, 32 // max(itemsize, 1))


def _pick_row_tile(n_rows, bytes_per_row, itemsize):
    sub = _sublane_pack(itemsize)
    if n_rows <= sub:
        return n_rows                          # block == full dim: always legal
    t = _ROW_BUDGET_BYTES // max(bytes_per_row, 1)
    t = min(t, _MAX_ROW_TILE, n_rows)
    t = max((t // sub) * sub, sub)
    if n_rows >= _MIN_GRID_STEPS * sub:        # >= ~4 parallel steps when possible
        t = min(t, _round_up(_cdiv(n_rows, _MIN_GRID_STEPS), sub))
    return t


# ----------------------------------------------------------------------------
# Kernels.
# ----------------------------------------------------------------------------
def _avgpool_lanes_kernel(x_ref, o_ref, *, window, channels, groups, inv_w):
    """Pooling window flattened into the lane axis (aligned path).

    x_ref: (t_rows, groups*window*channels); o_ref: (t_rows, groups*channels).
    Output lanes [m*C, (m+1)*C) = mean over k of input lanes
    [(m*window + k)*C, ... + C).
    """
    cols = []
    for m in range(groups):
        base = m * window * channels
        acc = x_ref[:, base:base + channels].astype(jnp.float32)
        for k in range(1, window):
            off = base + k * channels
            acc = acc + x_ref[:, off:off + channels].astype(jnp.float32)
        cols.append(acc * inv_w)
    out = cols[0] if groups == 1 else jnp.concatenate(cols, axis=-1)
    o_ref[...] = out.astype(o_ref.dtype)


def _avgpool_rows_kernel(x_ref, o_ref, *, window, out_rows, inv_w):
    """Pooling window on the sublane axis (remainder path; batch axis squeezed).

    x_ref: (t_in, C) with t_in >= out_rows*window; o_ref: (out_rows, C).
    Output row r = mean of input rows [r*window, (r+1)*window).
    """
    acc = x_ref[pl.ds(0, out_rows, stride=window), :].astype(jnp.float32)
    for k in range(1, window):
        acc = acc + x_ref[pl.ds(k, out_rows, stride=window), :].astype(jnp.float32)
    o_ref[...] = (acc * inv_w).astype(o_ref.dtype)


# ----------------------------------------------------------------------------
# Wrappers.
# ----------------------------------------------------------------------------
def _pool_aligned(x, window, L_out):
    """L % window == 0: free reshape puts the pooling window on the lane axis."""
    B, L, C = x.shape
    R = B * L_out
    itemsize = jnp.dtype(x.dtype).itemsize
    sub = _sublane_pack(itemsize)

    # Fold g consecutive output rows into lanes when C is not 128-aligned so
    # both the input DMA and the output stores are 128-lane dense.
    g = 1
    if C % 128 != 0:
        g = 128 // math.gcd(C, 128)
        while g > 1 and (R % g != 0 or (R // g) < sub):
            g //= 2

    Rg = R // g
    in_w = g * window * C
    out_w = g * C
    x2 = x.reshape(Rg, in_w)    # free reshape: row-major (B, L, C) is contiguous

    # TODO(synk): add a channel-tiled fallback if a single row (window*C) alone
    # blows the VMEM budget; t_rows is floored at one sublane group here.
    row_bytes = (_round_up(in_w, 128) + _round_up(out_w, 128)) * itemsize
    t_rows = _pick_row_tile(Rg, row_bytes, itemsize)

    kernel = functools.partial(_avgpool_lanes_kernel, window=window,
                               channels=C, groups=g, inv_w=1.0 / window)
    out2 = pl.pallas_call(
        kernel,
        out_shape=jax.ShapeDtypeStruct((Rg, out_w), x.dtype),
        grid=(_cdiv(Rg, t_rows),),
        in_specs=[pl.BlockSpec((t_rows, in_w), lambda i: (i, 0))],
        out_specs=pl.BlockSpec((t_rows, out_w), lambda i: (i, 0)),
        compiler_params=pltpu.CompilerParams(
            dimension_semantics=("parallel",),
            vmem_limit_bytes=_VMEM_LIMIT_BYTES,
        ),
    )(x2)
    return out2.reshape(B, L_out, C)


def _pool_remainder(x, window, L_out):
    """L % window != 0: skip the tail via BlockSpec indexing (no wrapper copy)."""
    B, L, C = x.shape
    itemsize = jnp.dtype(x.dtype).itemsize
    sub = _sublane_pack(itemsize)
    c_pad = _round_up(C, 128)

    if L * c_pad * itemsize <= _ROW_BUDGET_BYTES or L_out <= sub:
        # Whole per-batch sequence fits in one block: full-dim blocks, grid over B.
        # TODO(synk): pathological huge-window inputs (L_out tiny but L*C huge)
        # would need an extra input-splitting pass; windows here are small.
        t_out = L_out
        grid = (B,)
        in_spec = pl.BlockSpec((None, L, C), lambda b: (b, 0, 0))
        out_spec = pl.BlockSpec((None, L_out, C), lambda b: (b, 0, 0))
        dims = ("parallel",)
    else:
        bytes_per_out_row = (window + 1) * c_pad * itemsize
        t_out = _pick_row_tile(L_out, bytes_per_out_row, itemsize)  # mult. of sub
        t_in = t_out * window                                       # mult. of 8
        grid = (B, _cdiv(L_out, t_out))
        in_spec = pl.BlockSpec((None, t_in, C), lambda b, i: (b, i, 0))
        out_spec = pl.BlockSpec((None, t_out, C), lambda b, i: (b, i, 0))
        dims = ("parallel", "parallel")

    kernel = functools.partial(_avgpool_rows_kernel, window=window,
                               out_rows=t_out, inv_w=1.0 / window)
    return pl.pallas_call(
        kernel,
        out_shape=jax.ShapeDtypeStruct((B, L_out, C), x.dtype),
        grid=grid,
        in_specs=[in_spec],
        out_specs=out_spec,
        compiler_params=pltpu.CompilerParams(
            dimension_semantics=dims,
            vmem_limit_bytes=_VMEM_LIMIT_BYTES,
        ),
    )(x)


def pooling_model(x, window_size):
    """nn.AvgPool1d(window_size) applied over axis=1 of a (B, L, C) array."""
    B, L, C = x.shape
    L_out = L // window_size
    if L_out == 0:                       # degenerate case: empty output
        return jnp.zeros((B, 0, C), dtype=x.dtype)
    if L % window_size == 0:
        return _pool_aligned(x, window_size, L_out)
    return _pool_remainder(x, window_size, L_out)


if __name__ == "__main__":
    key = jax.random.PRNGKey(0)
    k1, k2, k3, k4 = jax.random.split(key, 4)

    # Case 1: evenly divisible sequence (lane-flattened fast path).
    B, L, C, w = 2, 16, 32, 4
    x = jax.random.normal(k1, (B, L, C), dtype=jnp.float32)
    out = jax.block_until_ready(pooling_model(x, w))
    ref = x.reshape(B, L // w, w, C).mean(axis=2)
    assert out.shape == (B, L // w, C), out.shape
    assert jnp.allclose(out, ref, atol=1e-5, rtol=1e-5), "mismatch (case 1)"

    # Case 2: trailing remainder dropped (in-kernel tail skip, strided loads).
    B2, L2, C2, w2 = 2, 18, 32, 4
    x2 = jax.random.normal(k2, (B2, L2, C2), dtype=jnp.float32)
    out2 = jax.block_until_ready(pooling_model(x2, w2))
    Lo2 = L2 // w2
    ref2 = x2[:, : Lo2 * w2, :].reshape(B2, Lo2, w2, C2).mean(axis=2)
    assert out2.shape == (B2, Lo2, C2), out2.shape
    assert jnp.allclose(out2, ref2, atol=1e-5, rtol=1e-5), "mismatch (case 2)"

    # Case 3: small channels -> output rows folded into lanes (g > 1).
    B3, L3, C3, w3 = 2, 64, 32, 4
    x3 = jax.random.normal(k3, (B3, L3, C3), dtype=jnp.float32)
    out3 = jax.block_until_ready(pooling_model(x3, w3))
    ref3 = x3.reshape(B3, L3 // w3, w3, C3).mean(axis=2)
    assert out3.shape == (B3, L3 // w3, C3), out3.shape
    assert jnp.allclose(out3, ref3, atol=1e-5, rtol=1e-5), "mismatch (case 3)"

    # Case 4: bf16 input (dtype-aware tiling, f32 accumulation in-kernel).
    B4, L4, C4, w4 = 2, 96, 64, 3
    x4 = jax.random.normal(k4, (B4, L4, C4), dtype=jnp.float32).astype(jnp.bfloat16)
    out4 = jax.block_until_ready(pooling_model(x4, w4))
    ref4 = x4.astype(jnp.float32).reshape(B4, L4 // w4, w4, C4).mean(axis=2)
    assert out4.shape == (B4, L4 // w4, C4), out4.shape
    assert jnp.allclose(out4.astype(jnp.float32), ref4, atol=2e-2, rtol=2e-2), \
        "mismatch (case 4)"

    print("KERNEL_OK")
</pallas_src>

<mosaic_0001>
module attributes {stable_mosaic.version = 11 : i64} {
  func.func @_avgpool_lanes_kernel(%arg0: i32, %arg1: memref<8x128xf32, #tpu.memory_space<vmem>>, %arg2: memref<8x32xf32, #tpu.memory_space<vmem>>) attributes {dimension_semantics = [#tpu.dimension_semantics<parallel>], iteration_bounds = array<i64: 1>, scalar_prefetch = 0 : i64, scratch_operands = 0 : i64, tpu.core_type = #tpu.core_type<tc>, window_params = [{transform_indices = @transform_0, window_bounds = array<i64: 8, 128>}, {transform_indices = @transform_1, window_bounds = array<i64: 8, 32>}]} {
    %c0 = arith.constant 0 : index
    %c0_0 = arith.constant 0 : index
    %0 = vector.load %arg1[%c0, %c0_0] : memref<8x128xf32, #tpu.memory_space<vmem>>, vector<8x32xf32>
    %c0_1 = arith.constant 0 : index
    %c32 = arith.constant 32 : index
    %1 = vector.load %arg1[%c0_1, %c32] : memref<8x128xf32, #tpu.memory_space<vmem>>, vector<8x32xf32>
    %2 = arith.addf %0, %1 : vector<8x32xf32>
    %c0_2 = arith.constant 0 : index
    %c64 = arith.constant 64 : index
    %3 = vector.load %arg1[%c0_2, %c64] : memref<8x128xf32, #tpu.memory_space<vmem>>, vector<8x32xf32>
    %4 = arith.addf %2, %3 : vector<8x32xf32>
    %c0_3 = arith.constant 0 : index
    %c96 = arith.constant 96 : index
    %5 = vector.load %arg1[%c0_3, %c96] : memref<8x128xf32, #tpu.memory_space<vmem>>, vector<8x32xf32>
    %6 = arith.addf %4, %5 : vector<8x32xf32>
    %cst = arith.constant 2.500000e-01 : f32
    %7 = vector.broadcast %cst : f32 to vector<8x32xf32>
    %8 = arith.mulf %6, %7 : vector<8x32xf32>
    %c0_4 = arith.constant 0 : index
    %c0_5 = arith.constant 0 : index
    %9 = vector.load %arg2[%c0_4, %c0_5] : memref<8x32xf32, #tpu.memory_space<vmem>>, vector<8x32xf32>
    tpu.vector_store %arg2[%c0_4, %c0_5], %8 {strides = array<i32>} : memref<8x32xf32, #tpu.memory_space<vmem>>, vector<8x32xf32>,
    return
  }
  func.func @transform_0(%arg0: i32) -> (i32, i32) {
    %c0_i32 = arith.constant 0 : i32
    %c0_i32_0 = arith.constant 0 : i32
    return %arg0, %c0_i32 : i32, i32
  }
  func.func @transform_1(%arg0: i32) -> (i32, i32) {
    %c0_i32 = arith.constant 0 : i32
    %c0_i32_0 = arith.constant 0 : i32
    return %arg0, %c0_i32 : i32, i32
  }
}

</mosaic_0001>

<bundles_post_ra>
// kernel: tpu_custom_call.1
= control target key start
LH: loop header
LB: loop body
LE: loop exit
PB: predicated region body
PF: predicated region fallthrough
CT: control target
= control target key end

     0   :  { %6 = vsyncpa [#allocation3], 0  ;;  %s135_s0 = inlined_call_operand.hbm [shape: f32[8,128], index: 0, kind: input, shape index: {}]   ;;  %s136_s1 = inlined_call_operand.hbm [shape: f32[8,32], index: 1, kind: output, shape index: {}]  }
   0x1   :  { %7 = vsyncpa [#allocation4], 0  ;;  %s13_s8 = sshll.u32 %s135_s0, 4  ;;  %s114_s9 = smov [#allocation2]   ;;  %s14_s8 = int_to_ptr.hbm [resolvable:$true] %s13_s8 }
   0x2   :  { %s15_s10 = sshll.u32 %s114_s9, 4  ;;  %s16_s10 = int_to_ptr.vmem [resolvable:$true] %s15_s10 }
   0x3   :  { %18 = dma.hbm_to_vmem [thread:$0]  %s14_s8, 128, %s16_s10, [#allocation3]  }
   0x4   :  { %110 = dma.done.wait [#allocation3], 128  }
   0x5   :  { %111 = vsyncadd [#allocation3], 4294967168  ;;  %v23_v0 = vld [vmem:[#allocation2] sm:$0xff]  ;;  %s115_s11 = smov 96   ;;  %s116_s12 = smov 32   ;;  %vm38_vm0 = vcmask 261120  }
   0x6   :  { %25 = vrot.lane.b32.xlu0 %v23_v0, %s115_s11  ;;  %33 = vrot.lane.b32.xlu1 %v23_v0, %s116_s12  ;;  %s117_s13 = smov 64   ;;  %s118_s0 = smov [#allocation5]  }
   0x7   :  { %s45_s14 = sshll.u32 %s118_s0, 4  ;;  %s47_s17 = sshll.u32 %s136_s1, 4  ;;  %s46_s14 = int_to_ptr.vmem [resolvable:$true] %s45_s14  ;;  %s48_s17 = int_to_ptr.hbm [resolvable:$true] %s47_s17 }
   0xe   :  { %29 = vrot.lane.b32.xlu0 %v23_v0, %s117_s13 }
  0x78   :  { %v26_v1 = vpop.permute.xlu0 %25  ;;  %v34_v4 = vpop.permute.xlu1 %33 }
  0x79   :  { %v28_v2 = vadd.f32 %v26_v1, %v23_v0 }
  0x80   :  { %v30_v3 = vpop.permute.xlu0 %29 }
  0x81   :  { %v32_v5 = vadd.f32 %v30_v3, %v28_v2 }
  0x83   :  { %v36_v6 = vadd.f32 %v34_v4, %v32_v5 }
  0x85   :  { %v37_v7 = vmul.f32 0.25, %v36_v6 }
  0x87   :  { %39 = vst.msk [vmem:[#allocation5] sm:$0xff] %vm38_vm0, %v37_v7 }
  0x88   :  { %50 = dma.vmem_to_hbm [thread:$0]  %s46_s14, 128, %s48_s17, [#allocation4]  }
  0x89   :  { %112 = dma.done.wait [#allocation4], 128  }
  0x8a   :  { %113 = vsyncadd [#allocation4], 4294967168 }
  0x8b   :  { %55 = vsyncpa [#allocation3], 1 }
  0x8c   :  { %56 = vsyncpa [#allocation4], 1 }

</bundles_post_ra>
